<compile_context>
chip_gen: v5e
topology: v5e:2x2
jax: 0.10.0
libtpu: 0.0.40
codegen_flags: <defaults>
</compile_context>

<pallas_src>
import functools

import jax
import jax.numpy as jnp
from jax.experimental import pallas as pl
from jax.experimental.pallas import tpu as pltpu

N_BASIS = 5   # synthetic basis of the relative position d: [1, dx, dy, dz, |d|]
LANE = 128
_RESIDENT_G_VMEM_BUDGET = 40 * 1024 * 1024   # double-buffered resident G + transients must fit


def _round_up(x, m):
    return ((x + m - 1) // m) * m


def _nconv_kernel(geo_a_ref, geo_bt_ref, g_ref, out_ref, *scratch,
                  radius_sq, compute_dtype, tb, g_resident, acc_in_out):
    """One (batch, a_tile, b_tile) grid step.

    geo_a_ref : (1, ta, 3)                        a-side points (f32)
    geo_bt_ref: (1, 3, tb)                        b-side points, transposed (lane-dense)
    g_ref     : (1, F, Np|tb, c_out_p)            per-basis projection G[f,b,i] = feat[b] @ W_f^T
                                                  (full Np when resident, else one b tile)
    out_ref   : (1, ta, c_out_p)                  lane-dense output tile
    scratch   : optional (ta, c_out_p) f32 acc    only when the output dtype is not f32
    """
    b_idx = pl.program_id(2)

    geo_a = geo_a_ref[0]        # (ta, 3)
    geo_bt = geo_bt_ref[0]      # (3, tb)

    # Per-coordinate pairwise maps, (ta, tb): fully lane-dense VPU work, no (n, n, 3) tensor.
    dx = geo_bt[0:1, :] - geo_a[:, 0:1]          # d[a, b] = geo_b[b] - geo_a[a]
    dy = geo_bt[1:2, :] - geo_a[:, 1:2]
    dz = geo_bt[2:3, :] - geo_a[:, 2:3]
    d2 = dx * dx + dy * dy + dz * dz
    mask = (d2 < radius_sq).astype(jnp.float32)  # neighbor mask from r^2 (sqrt off this path)
    r = jnp.sqrt(d2)                             # only the radial basis term needs sqrt (EUP)

    # Fused masked-basis slab (ta, F*tb): each term is cast to the compute dtype BEFORE the
    # concat, so no f32 slab is materialised and no second whole-slab cast pass is needed.
    cd = compute_dtype
    m_cat = jnp.concatenate(
        [mask.astype(cd), (mask * dx).astype(cd), (mask * dy).astype(cd),
         (mask * dz).astype(cd), (mask * r).astype(cd)], axis=1)

    if g_resident:
        # G is resident in VMEM for the whole batch element; slice the current b tile.
        off = pl.multiple_of(b_idx * tb, tb)
        g = g_ref[0, :, pl.ds(off, tb), :]       # (F, tb, c_out_p)
    else:
        g = g_ref[0]                             # (F, tb, c_out_p)
    # tb is kept a multiple of the sublane pack, so this collapse is layout-free.
    g_cat = g.reshape(N_BASIS * tb, g.shape[-1])

    # One MXU contraction with K = F*tb instead of 5 small ones; f32 accumulation.
    contrib = jnp.dot(m_cat, g_cat, preferred_element_type=jnp.float32)   # (ta, c_out_p)

    if acc_in_out:
        # f32 output: accumulate directly in the (b-resident) output block, no scratch copy.
        @pl.when(b_idx == 0)
        def _first():
            out_ref[0] = contrib.astype(out_ref.dtype)

        @pl.when(b_idx > 0)
        def _rest():
            out_ref[0] += contrib.astype(out_ref.dtype)
    else:
        acc_ref = scratch[0]

        @pl.when(b_idx == 0)
        def _init():
            acc_ref[...] = jnp.zeros_like(acc_ref)

        acc_ref[...] += contrib

        @pl.when(b_idx == pl.num_programs(2) - 1)
        def _finalize():
            out_ref[0] = acc_ref[...].astype(out_ref.dtype)


def neighbors_convolution(features, geometry, weight, radius, n_norm=1.0, *,
                          max_a_tile=512, max_b_tile=256, use_bf16=True, g_resident=None):
    """features [B,N,Cin], geometry [B,N,3], weight [F,Cout,Cin] -> [B,N,Cout]."""
    batch, n, c_in = features.shape
    nb, c_out, c_in_w = weight.shape
    assert geometry.shape == (batch, n, 3)
    assert nb == N_BASIS and c_in_w == c_in
    assert max_a_tile % max_b_tile == 0

    out_dtype = features.dtype
    acc_in_out = jnp.dtype(out_dtype) == jnp.dtype(jnp.float32)
    compute_dtype = jnp.bfloat16 if use_bf16 else jnp.float32

    # --- tile selection -------------------------------------------------------------------
    # 32 keeps tb a multiple of the sublane pack (16 bf16 / 8 f32) so the in-kernel
    # (F, tb, c) -> (F*tb, c) collapse is layout-free.
    np32 = _round_up(n, 32)
    if np32 <= max_a_tile:
        ta = tb = np32
        np_pad = np32
    else:
        ta, tb = max_a_tile, max_b_tile
        np_pad = _round_up(n, max_a_tile)
    a_tiles = np_pad // ta
    # v7x megacore: keep batch * a_tiles >= 2 so both TensorCores get 'parallel' work.
    if batch * a_tiles < 2 and ta >= 64:
        ta //= 2                                  # a_tiles was 1 => ta == np_pad, still divides
        a_tiles = np_pad // ta
    b_tiles = np_pad // tb

    # Lane-dense output / G channel dim.  (If c_out > 128 on v6e/v7x, padding to 256 would fill
    # the full MXU width; kept at 128 granularity here.)
    c_out_p = _round_up(c_out, LANE)

    # --- hoisted XLA-side preprocessing (cheap, done once per call) ------------------------
    # Fold 1/sqrt(n_norm) into the (tiny) weights; pad c_out with zeros to a lane multiple.
    w = weight.astype(jnp.float32) * (1.0 / (float(n_norm) ** 0.5))
    w = jnp.pad(w, ((0, 0), (0, c_out_p - c_out), (0, 0)))               # (F, c_out_p, c_in)

    feat = features.astype(jnp.float32)
    geo = geometry.astype(jnp.float32)
    if np_pad != n:
        # Invariant: padded points have zero features, so their G rows are exactly zero and
        # they contribute nothing even when their (origin-located) mask entries are 1.
        feat = jnp.pad(feat, ((0, 0), (0, np_pad - n), (0, 0)))
        geo = jnp.pad(geo, ((0, 0), (0, np_pad - n), (0, 0)))

    # Hoisted per-basis projection G[z,f,b,i] = sum_j feat[z,b,j] * W[f,i,j].
    g = jnp.einsum('zbj,fij->zfbi', feat, w,
                   precision=jax.lax.Precision.HIGHEST)                  # (B, F, Np, c_out_p)
    g = g.astype(compute_dtype)                                          # bf16 halves G bytes
    geo_bt = jnp.transpose(geo, (0, 2, 1))                               # (B, 3, Np)

    g_item = jnp.dtype(compute_dtype).itemsize
    out_item = jnp.dtype(out_dtype).itemsize

    def _vmem_bytes(resident):
        g_rows = np_pad if resident else tb
        geo_b = 2 * (ta * LANE * 4 + 8 * tb * 4)                 # (ta,3) pads to 128 lanes
        g_b = 2 * N_BASIS * g_rows * c_out_p * g_item            # double-buffered G block
        out_b = 2 * ta * c_out_p * out_item
        acc_b = 0 if acc_in_out else ta * c_out_p * 4
        transient = N_BASIS * ta * tb * g_item + 8 * ta * tb * 4  # slab + pairwise f32 maps
        return geo_b + g_b + out_b + acc_b + transient

    if g_resident is None:
        g_resident = _vmem_bytes(True) <= _RESIDENT_G_VMEM_BUDGET
    vmem_est = _vmem_bytes(g_resident)
    vmem_limit = None
    if vmem_est > 12 * 1024 * 1024:   # past the smallest scoped default -> set it explicitly
        vmem_limit = min(max(int(vmem_est * 1.3), 32 * 1024 * 1024), 56 * 1024 * 1024)

    if g_resident:
        # Block index changes only with z => G is DMA'd once per batch element.
        g_spec = pl.BlockSpec((1, N_BASIS, np_pad, c_out_p), lambda z, a, b: (z, 0, 0, 0))
    else:
        # Streamed per-b-tile G for large point counts.
        # TODO(synk): sweep pipeline_mode=pl.Buffered(3) on this spec for a few extra percent.
        g_spec = pl.BlockSpec((1, N_BASIS, tb, c_out_p), lambda z, a, b: (z, 0, b, 0))

    kernel = functools.partial(
        _nconv_kernel,
        radius_sq=float(radius) * float(radius),
        compute_dtype=compute_dtype,
        tb=tb,
        g_resident=g_resident,
        acc_in_out=acc_in_out)

    g_stream_factor = 1 if g_resident else a_tiles
    flops = int(2 * batch * np_pad * np_pad * N_BASIS * c_out_p      # fused matmul
                + 12 * batch * np_pad * np_pad)                      # pairwise elementwise
    bytes_accessed = int(batch * (np_pad * 3 * 4 * (1 + a_tiles)
                                  + N_BASIS * np_pad * c_out_p * g_item * g_stream_factor
                                  + np_pad * c_out_p * out_item))

    scratch_shapes = [] if acc_in_out else [pltpu.VMEM((ta, c_out_p), jnp.float32)]

    out = pl.pallas_call(
        kernel,
        out_shape=jax.ShapeDtypeStruct((batch, np_pad, c_out_p), out_dtype),
        grid_spec=pltpu.PrefetchScalarGridSpec(
            num_scalar_prefetch=0,
            grid=(batch, a_tiles, b_tiles),
            in_specs=[
                pl.BlockSpec((1, ta, 3), lambda z, a, b: (z, a, 0)),       # geo (a side)
                pl.BlockSpec((1, 3, tb), lambda z, a, b: (z, 0, b)),       # geo^T (b side)
                g_spec,                                                    # projected G
            ],
            out_specs=pl.BlockSpec((1, ta, c_out_p), lambda z, a, b: (z, a, 0)),
            scratch_shapes=scratch_shapes,
        ),
        compiler_params=pltpu.CompilerParams(
            dimension_semantics=("parallel", "parallel", "arbitrary"),
            vmem_limit_bytes=vmem_limit),
        cost_estimate=pl.CostEstimate(flops=flops,
                                      transcendentals=int(batch * np_pad * np_pad),
                                      bytes_accessed=bytes_accessed),
    )(geo, geo_bt, g)

    return out[:, :n, :c_out]


def _reference(features, geometry, weight, radius, n_norm=1.0):
    """Pure-JAX dense equivalent of the PyTorch forward (neighbor list == masked sum).

    The neighbor test uses squared distance (mathematically identical to ``norm < radius``)
    so the mask matches the kernel bit-for-bit away from measure-zero boundary cases.
    """
    f32 = jnp.float32
    feat = features.astype(f32)
    geo = geometry.astype(f32)
    w = weight.astype(f32)
    diff = geo[:, None, :, :] - geo[:, :, None, :]                    # [z, a, b, 3] = rb - ra
    d2 = diff[..., 0] * diff[..., 0] + diff[..., 1] * diff[..., 1] + diff[..., 2] * diff[..., 2]
    r = jnp.sqrt(d2)
    rel_mask = (d2 < float(radius) * float(radius)).astype(f32)       # [z, a, b]
    basis = jnp.stack([jnp.ones_like(r), diff[..., 0], diff[..., 1], diff[..., 2], r],
                      axis=-1)                                        # [z, a, b, F]
    k = jnp.einsum('zabf,fij->zabij', basis, w,
                   precision=jax.lax.Precision.HIGHEST) / (float(n_norm) ** 0.5)
    return jnp.einsum('zab,zabij,zbj->zai', rel_mask, k, feat,
                      precision=jax.lax.Precision.HIGHEST)


if __name__ == "__main__":
    key = jax.random.PRNGKey(0)
    kg, kf, kw, kg2, kf2 = jax.random.split(key, 5)

    batch, n, c_in, c_out = 2, 16, 4, 8
    radius, n_norm = 1.5, 1.0

    # Quarter-grid coordinates keep all squared distances exactly representable, so the
    # neighbor mask is bit-identical between kernel and reference (no boundary flakiness).
    geometry = jnp.round(4.0 * jax.random.normal(kg, (batch, n, 3), dtype=jnp.float32)) / 4.0
    features = jax.random.normal(kf, (batch, n, c_in), dtype=jnp.float32)
    weight = 0.1 * jax.random.normal(kw, (N_BASIS, c_out, c_in), dtype=jnp.float32)

    ref = _reference(features, geometry, weight, radius, n_norm)

    # 1) f32 MXU-input path, resident G, direct-in-output accumulation: exact check.
    out_f32 = jax.block_until_ready(
        neighbors_convolution(features, geometry, weight, radius, n_norm, use_bf16=False))
    assert out_f32.shape == (batch, n, c_out)
    assert jnp.allclose(out_f32, ref, atol=1e-4, rtol=1e-4), \
        float(jnp.max(jnp.abs(out_f32 - ref)))

    # 2) bf16 MXU fast path with the streamed-G BlockSpec forced (exercises that code path).
    out_bf16 = jax.block_until_ready(
        neighbors_convolution(features, geometry, weight, radius, n_norm,
                              use_bf16=True, g_resident=False))
    assert out_bf16.shape == (batch, n, c_out)
    assert jnp.allclose(out_bf16, ref, atol=5e-2, rtol=5e-2), \
        float(jnp.max(jnp.abs(out_bf16 - ref)))

    # 3) bf16 features/output: exercises the f32 scratch-accumulator path.
    feat_bf16 = features.astype(jnp.bfloat16)
    ref_bf16_in = _reference(feat_bf16.astype(jnp.float32), geometry, weight, radius, n_norm)
    out_b = jax.block_until_ready(
        neighbors_convolution(feat_bf16, geometry, weight, radius, n_norm, use_bf16=True))
    assert out_b.dtype == jnp.bfloat16 and out_b.shape == (batch, n, c_out)
    assert jnp.allclose(out_b.astype(jnp.float32), ref_bf16_in, atol=1e-1, rtol=1e-1), \
        float(jnp.max(jnp.abs(out_b.astype(jnp.float32) - ref_bf16_in)))

    # 4) Larger point count: decoupled ta=512 / tb=256, padding, multi-tile grid, resident G.
    batch2, n2 = 1, 520
    geometry2 = jnp.round(4.0 * jax.random.normal(kg2, (batch2, n2, 3), dtype=jnp.float32)) / 4.0
    features2 = jax.random.normal(kf2, (batch2, n2, c_in), dtype=jnp.float32)
    ref2 = _reference(features2, geometry2, weight, radius, n_norm)
    out2 = jax.block_until_ready(
        neighbors_convolution(features2, geometry2, weight, radius, n_norm, use_bf16=False))
    assert out2.shape == (batch2, n2, c_out)
    assert jnp.allclose(out2, ref2, atol=2e-3, rtol=2e-3), \
        float(jnp.max(jnp.abs(out2 - ref2)))

    print("KERNEL_OK")
</pallas_src>

<mosaic_0001>
module attributes {stable_mosaic.version = 11 : i64} {
  func.func @_nconv_kernel(%arg0: i32, %arg1: i32, %arg2: i32, %arg3: memref<1x32x3xf32, #tpu.memory_space<vmem>>, %arg4: memref<1x3x32xf32, #tpu.memory_space<vmem>>, %arg5: memref<1x5x32x128xf32, #tpu.memory_space<vmem>>, %arg6: memref<1x32x128xf32, #tpu.memory_space<vmem>>) attributes {dimension_semantics = [#tpu.dimension_semantics<parallel>, #tpu.dimension_semantics<parallel>, #tpu.dimension_semantics<arbitrary>], iteration_bounds = array<i64: 2, 1, 1>, scalar_prefetch = 0 : i64, scratch_operands = 0 : i64, tpu.core_type = #tpu.core_type<tc>, window_params = [{transform_indices = @transform_0, window_bounds = array<i64: 1, 32, 3>}, {transform_indices = @transform_1, window_bounds = array<i64: 1, 3, 32>}, {transform_indices = @transform_2, window_bounds = array<i64: 1, 5, 32, 128>}, {transform_indices = @transform_3, window_bounds = array<i64: 1, 32, 128>}]} {
    %c0 = arith.constant 0 : index
    %c0_0 = arith.constant 0 : index
    %c0_1 = arith.constant 0 : index
    %0 = vector.load %arg3[%c0, %c0_0, %c0_1] : memref<1x32x3xf32, #tpu.memory_space<vmem>>, vector<1x32x3xf32>
    %1 = vector.shape_cast %0 : vector<1x32x3xf32> to vector<32x3xf32>
    %c0_2 = arith.constant 0 : index
    %c0_3 = arith.constant 0 : index
    %c0_4 = arith.constant 0 : index
    %2 = vector.load %arg4[%c0_2, %c0_3, %c0_4] : memref<1x3x32xf32, #tpu.memory_space<vmem>>, vector<1x3x32xf32>
    %3 = vector.shape_cast %2 : vector<1x3x32xf32> to vector<3x32xf32>
    %4 = vector.extract_strided_slice %3 {offsets = [0, 0], sizes = [1, 32], strides = [1, 1]} : vector<3x32xf32> to vector<1x32xf32>
    %5 = vector.extract_strided_slice %1 {offsets = [0, 0], sizes = [32, 1], strides = [1, 1]} : vector<32x3xf32> to vector<32x1xf32>
    %6 = vector.broadcast %4 : vector<1x32xf32> to vector<32x32xf32>
    %7 = vector.broadcast %5 : vector<32x1xf32> to vector<32x32xf32>
    %8 = arith.subf %6, %7 : vector<32x32xf32>
    %9 = vector.extract_strided_slice %3 {offsets = [1, 0], sizes = [1, 32], strides = [1, 1]} : vector<3x32xf32> to vector<1x32xf32>
    %10 = vector.extract_strided_slice %1 {offsets = [0, 1], sizes = [32, 1], strides = [1, 1]} : vector<32x3xf32> to vector<32x1xf32>
    %11 = vector.broadcast %9 : vector<1x32xf32> to vector<32x32xf32>
    %12 = vector.broadcast %10 : vector<32x1xf32> to vector<32x32xf32>
    %13 = arith.subf %11, %12 : vector<32x32xf32>
    %14 = vector.extract_strided_slice %3 {offsets = [2, 0], sizes = [1, 32], strides = [1, 1]} : vector<3x32xf32> to vector<1x32xf32>
    %15 = vector.extract_strided_slice %1 {offsets = [0, 2], sizes = [32, 1], strides = [1, 1]} : vector<32x3xf32> to vector<32x1xf32>
    %16 = vector.broadcast %14 : vector<1x32xf32> to vector<32x32xf32>
    %17 = vector.broadcast %15 : vector<32x1xf32> to vector<32x32xf32>
    %18 = arith.subf %16, %17 : vector<32x32xf32>
    %19 = arith.mulf %8, %8 : vector<32x32xf32>
    %20 = arith.mulf %13, %13 : vector<32x32xf32>
    %21 = arith.addf %19, %20 : vector<32x32xf32>
    %22 = arith.mulf %18, %18 : vector<32x32xf32>
    %23 = arith.addf %21, %22 : vector<32x32xf32>
    %cst = arith.constant 2.250000e+00 : f32
    %24 = vector.broadcast %cst : f32 to vector<32x32xf32>
    %25 = arith.cmpf olt, %23, %24 : vector<32x32xf32>
    %26 = arith.extui %25 : vector<32x32xi1> to vector<32x32xi32>
    %27 = arith.sitofp %26 : vector<32x32xi32> to vector<32x32xf32>
    %28 = math.sqrt %23 : vector<32x32xf32>
    %29 = arith.mulf %27, %8 : vector<32x32xf32>
    %30 = arith.mulf %27, %13 : vector<32x32xf32>
    %31 = arith.mulf %27, %18 : vector<32x32xf32>
    %32 = arith.mulf %27, %28 : vector<32x32xf32>
    %33 = tpu.concatenate %27, %29, %30, %31, %32 in 1 : vector<32x32xf32>, vector<32x32xf32>, vector<32x32xf32>, vector<32x32xf32>, vector<32x32xf32> -> vector<32x160xf32>
    %c32_i32 = arith.constant 32 : i32
    %34 = arith.muli %arg2, %c32_i32 : i32
    %35 = tpu.assume_multiple %34, 32 : i32
    %c0_5 = arith.constant 0 : index
    %c0_6 = arith.constant 0 : index
    %36 = arith.index_cast %35 : i32 to index
    %c0_7 = arith.constant 0 : index
    %37 = vector.load %arg5[%c0_5, %c0_6, %36, %c0_7] : memref<1x5x32x128xf32, #tpu.memory_space<vmem>>, vector<1x5x32x128xf32>
    %38 = vector.shape_cast %37 : vector<1x5x32x128xf32> to vector<5x32x128xf32>
    %39 = vector.shape_cast %38 : vector<5x32x128xf32> to vector<160x128xf32>
    %cst_8 = arith.constant dense<0.000000e+00> : vector<32x128xf32>
    %40 = tpu.matmul %33, %39, %cst_8 {dimension_numbers = #tpu.dot_dimension_numbers<[1], [0], [0], [1], [0, 0, 1, 1], [], []>} : vector<32x160xf32>, vector<160x128xf32>, vector<32x128xf32> -> vector<32x128xf32>
    %c0_i32 = arith.constant 0 : i32
    %41 = arith.cmpi eq, %arg2, %c0_i32 : i32
    %42 = arith.extui %41 : i1 to i32
    %c0_i32_9 = arith.constant 0 : i32
    %43 = arith.cmpi ne, %42, %c0_i32_9 : i32
    scf.if %43 {
      %c0_12 = arith.constant 0 : index
      %c0_13 = arith.constant 0 : index
      %c0_14 = arith.constant 0 : index
      %47 = vector.load %arg6[%c0_12, %c0_13, %c0_14] : memref<1x32x128xf32, #tpu.memory_space<vmem>>, vector<1x32x128xf32>
      %48 = vector.shape_cast %47 : vector<1x32x128xf32> to vector<32x128xf32>
      %49 = vector.shape_cast %40 : vector<32x128xf32> to vector<1x32x128xf32>
      tpu.vector_store %arg6[%c0_12, %c0_13, %c0_14], %49 {strides = array<i32>} : memref<1x32x128xf32, #tpu.memory_space<vmem>>, vector<1x32x128xf32>,
    } else {
    }
    %c0_i32_10 = arith.constant 0 : i32
    %44 = arith.cmpi sgt, %arg2, %c0_i32_10 : i32
    %45 = arith.extui %44 : i1 to i32
    %c0_i32_11 = arith.constant 0 : i32
    %46 = arith.cmpi ne, %45, %c0_i32_11 : i32
    scf.if %46 {
      %c0_12 = arith.constant 0 : index
      %c0_13 = arith.constant 0 : index
      %c0_14 = arith.constant 0 : index
      %47 = vector.load %arg6[%c0_12, %c0_13, %c0_14] : memref<1x32x128xf32, #tpu.memory_space<vmem>>, vector<1x32x128xf32>
      %48 = vector.shape_cast %47 : vector<1x32x128xf32> to vector<32x128xf32>
      %49 = arith.addf %48, %40 : vector<32x128xf32>
      %c0_15 = arith.constant 0 : index
      %c0_16 = arith.constant 0 : index
      %c0_17 = arith.constant 0 : index
      %50 = vector.load %arg6[%c0_15, %c0_16, %c0_17] : memref<1x32x128xf32, #tpu.memory_space<vmem>>, vector<1x32x128xf32>
      %51 = vector.shape_cast %50 : vector<1x32x128xf32> to vector<32x128xf32>
      %52 = vector.shape_cast %49 : vector<32x128xf32> to vector<1x32x128xf32>
      tpu.vector_store %arg6[%c0_15, %c0_16, %c0_17], %52 {strides = array<i32>} : memref<1x32x128xf32, #tpu.memory_space<vmem>>, vector<1x32x128xf32>,
    } else {
    }
    return
  }
  func.func @transform_0(%arg0: i32, %arg1: i32, %arg2: i32) -> (i32, i32, i32) {
    %c0_i32 = arith.constant 0 : i32
    %c0_i32_0 = arith.constant 0 : i32
    return %arg0, %arg1, %c0_i32 : i32, i32, i32
  }
  func.func @transform_1(%arg0: i32, %arg1: i32, %arg2: i32) -> (i32, i32, i32) {
    %c0_i32 = arith.constant 0 : i32
    %c0_i32_0 = arith.constant 0 : i32
    return %arg0, %c0_i32, %arg2 : i32, i32, i32
  }
  func.func @transform_2(%arg0: i32, %arg1: i32, %arg2: i32) -> (i32, i32, i32, i32) {
    %c0_i32 = arith.constant 0 : i32
    %c0_i32_0 = arith.constant 0 : i32
    %c0_i32_1 = arith.constant 0 : i32
    %c0_i32_2 = arith.constant 0 : i32
    return %arg0, %c0_i32, %c0_i32_0, %c0_i32_1 : i32, i32, i32, i32
  }
  func.func @transform_3(%arg0: i32, %arg1: i32, %arg2: i32) -> (i32, i32, i32) {
    %c0_i32 = arith.constant 0 : i32
    %c0_i32_0 = arith.constant 0 : i32
    return %arg0, %arg1, %c0_i32 : i32, i32, i32
  }
}

</mosaic_0001>

<bundles_post_ra>
// kernel: tpu_custom_call.1
= control target key start
LH: loop header
LB: loop body
LE: loop exit
PB: predicated region body
PF: predicated region fallthrough
CT: control target
= control target key end

     0   :  { %8 = vsyncpa [#allocation3], 0  ;;  %s1342_s0 = inlined_call_operand.vmem [shape: f32[2,32,3], index: 0, kind: input, shape index: {}]   ;;  %s1343_s1 = inlined_call_operand.vmem [shape: f32[2,3,32], index: 1, kind: input, shape index: {}]   ;;  %s1344_s2 = inlined_call_operand.hbm [shape: f32[2,5,32,128], index: 2, kind: input, shape index: {}]   ;;  %s1345_s3 = inlined_call_operand.hbm [shape: f32[2,32,128], index: 3, kind: output, shape index: {}]  }
   0x1   :  { %10 = vsyncpa [#allocation3 + $0x1], 0 }
   0x2   :  { %11 = vsyncpa [#allocation4], 0 }
   0x3   :  { %13 = vsyncpa [#allocation4 + $0x1], 0  ;;  %s1082_s12 = smov 0   ;;  %s1084_s13 = smov 0  }
   0x4   :  { %s1086_s14 = smov 0   ;;  %s1088_s15 = smov 0  }
   0x5   :  { %s1090_s16 = smov 0   ;;  %s1092_s17 = smov 0  }
   0x6 LB: > { %s764_s18 = sadd.s32 4294967295, %s1049_s17   ;;  %s765_s19 = sadd.s32 4294967294, %s1049_s17   ;;  %s1049_s17 = sphi %s1092_s17, %s19_s17   ;;  %s1045_s16 = sphi %s1090_s16, %s1354_s16   ;;  %s1041_s15 = sphi %s1088_s15, %s1353_s15   ;;  %s1037_s14 = sphi %s1086_s14, %s1352_s14   ;;  %s1033_s13 = sphi %s1084_s13, %s1351_s13   ;;  %s1029_s12 = sphi %s1082_s12, %s1350_s12  }
   0x7   : > { %s38_s20 = sadd.s32 1, %s1045_s16  ;;  %s101_s21 = sadd.s32 1, %s1037_s14 }
   0x8   : > { %p40_p0 = scmp.ge.s32.totalorder %s38_s20, 2  ;;  %p108_p1 = scmp.ne.s32.totalorder %s1037_s14, %s1033_s13 }
   0x9   : > { %p109_p2 = scmp.eq.s32.totalorder %s1049_s17, 0  ;;  %p114_p3 = scmp.ne.s32.totalorder %s1033_s13, %s1029_s12 }
   0xa   : > { %s1356_s20 = smov (%p40_p0, %s38_s20), 0  ;;  %p115_p5 = scmp.eq.s32.totalorder %s764_s18, 0 }
   0xb   : > { %p1123_p4 = por %p109_p2, %p108_p1  ;;  %s98_s23 = ssub.s32 %s1045_s16, %s1356_s20 }
   0xc   : > { %p140_p6 = scmp.eq.s32.totalorder %s764_s18, 1  ;;  %p99_p7 = scmp.eq.s32.totalorder %s98_s23, 0 }
   0xd   : > { %p1129_p8 = por %p115_p5, %p114_p3  ;;  %p146_p10 = scmp.eq.s32.totalorder %s765_s19, 1 }
   0xe   : > { %p1133_p9 = por %p140_p6, %p108_p1  ;;  %p767_p12 = scmp.ge.s32.totalorder %s1049_s17, 2 }
   0xf   : > { %s1138_s26 = scalar_select %p99_p7, %s1037_s14, %s101_s21  }
  0x10   : > { %p1140_p11 = por %p146_p10, %p114_p3  ;;  %p836_p13 = scmp.lt.s32.totalorder %s1049_s17, 2 }
  0x11   : > { %s189_s28 = sand.u32 1, %s1037_s14   ;;  %s822_s30 = smul.u32 160, %s1045_s16 }
  0x12   : > { %s821_s29 = smul.u32 160, %s189_s28  ;;  %p829_p0 = pnand %p836_p13, %p1123_p4 }
  0x13   : > { %s198_s6 = scalar_lea.hbm %s1344_s2, %s822_s30  ;;  %p769_p1 = scmp.ge.s32.totalorder %s1049_s17, 1 }
  0x14   : > { %s193_s7 = scalar_lea.vmem [#allocation2], %s821_s29  ;;  %s199_s9 = sshll.u32 %s198_s6, 4  ;;  %s200_s9 = int_to_ptr.hbm [resolvable:$true] %s199_s9 }
  0x15   : > { %s201_s8 = sshll.u32 %s193_s7, 4  ;;  %s190_s10 = scalar_lea.sflag [#allocation3], %s189_s28  ;;  %s202_s8 = int_to_ptr.vmem [resolvable:$true] %s201_s8 }
  0x16   : > { %s1051_s11 = smov 128   ;;  %s1052_s18 = smov 8  }
  0x17   : > { %831 = dma.hbm_to_vmem [thread:$0]  (!%p829_p0), %s200_s9, 2560, %s202_s8, %s190_s10, %s1051_s11, %s1051_s11, %s1052_s18  }
  0x18   : > { %p209_p2 = scmp.lt.s32.totalorder %s1049_s17, 3 }
  0x1a   : > { %p210_p3 = pnand %p769_p1, %p209_p2 }
  0x1b   : > { %s1156_s19 = sand.u32 (!%p210_p3), 1, %s1033_s13  }
  0x1c   : > { %213 = sbr.rel (%p210_p3) target bundleno = 450 (0x1c2), region = 32  ;;  %s216_s22 = scalar_lea.sflag (!%p210_p3), [#allocation3], %s1156_s19 }
  0x1d   : > { %s823_s21 = smul.u32 (!%p210_p3), 160, %s1156_s19 }
  0x1f   : > { %s1160_s23 = scalar_lea.vmem (!%p210_p3), [#allocation2], %s823_s21 }
  0x21   : > { %1020 = dma.done.wait (%p1129_p8), %s216_s22, 2560  }
  0x22   : > { %1022 = vsyncadd (%p1129_p8), %s216_s22, 4294964736  ;;  %p260_p4 = scmp.lt.s32.totalorder %s1041_s15, 1  ;;  %v1053_v0 = vmov 2   ;;  %v1054_v1 = vmov 0   ;;  %v1055_v5 = vmov 1   ;;  %v1056_v38 = vmov 0.0  }
  0x23   : > { %899 = vset.pattern.permute.xlu1 %v1053_v0  ;;  %897 = vset.pattern.permute.xlu0 %v1054_v1  ;;  %s1057_s9 = smov 64   ;;  %s1058_s10 = smov 32   ;;  %v529_v56 = vld [vmem:[%s1160_s23 + $0x98] sm:$0xff]  ;;  %v528_v57 = vld [vmem:[%s1160_s23 + $0x90] sm:$0xff]  ;;  %v527_v59 = vld [vmem:[%s1160_s23 + $0x88] sm:$0xff]  ;;  %vm493_vm6 = vcmask 261120  }
  0x24   : > { %s1168_s28 = scalar_select %p260_p4, %s1041_s15, 1  ;;  %901 = vset.pattern.permute.xlu2 %v1054_v1  ;;  %583 = vmatpush.msra.mxu1 %v529_v56  ;;  %vm498_vm13 = vcmask 523264   ;;  %vm503_vm14 = vcmask 785408  }
  0x25   : > { %s1059_s11 = smov 96   ;;  %s770_s18 = sshll.u32 %s1156_s19, 5 }
  0x26   : > { %s787_s29 = sshll.u32 %s1168_s28, 5  ;;  %s773_s24 = sshll.u32 %s1168_s28, 2  ;;  %584 = vmatpush.msra.mxu1 %v528_v57 }
  0x27   : > { %s267_s5 = scalar_lea.vmem %s1342_s0, %s787_s29  ;;  %s275_s8 = scalar_lea.vmem %s1343_s1, %s773_s24 }
  0x28   : > { %v279_v2 = vld [vmem:[%s267_s5 + $0x10] sm:$0xff]  ;;  %v280_v3 = vld [vmem:[%s267_s5 + $0x18] sm:$0xff]  ;;  %v278_v4 = vld [vmem:[%s267_s5 + $0x8] sm:$0xff]  ;;  %585 = vmatpush.msra.mxu1 %v527_v59  ;;  %s258_s21 = scalar_lea.vmem [#allocation5], %s770_s18  ;;  %s788_s22 = sshll.u32 %s1041_s15, 5 }
  0x29   : > { %338 = vperm.xlu1 %899, %v279_v2   ;;  %295 = vperm.xlu0 %897, %v279_v2   ;;  %v277_v6 = vld [vmem:[%s267_s5] sm:$0xff]  ;;  %s638_s29 = scalar_lea.hbm %s1345_s3, %s788_s22  ;;  %s639_s30 = sshll.u32 %s258_s21, 4  ;;  %s640_s30 = int_to_ptr.vmem [resolvable:$true] %s639_s30 }
  0x2a   : > { %300 = vperm.xlu2 %901, %v280_v3   ;;  %v281_v11 = vld [vmem:[%s275_s8] sm:$0x7]  ;;  %s641_s4 = sshll.u32 %s638_s29, 4  ;;  %s625_s5 = scalar_lea.sflag [#allocation4], %s1156_s19  ;;  %s642_s4 = int_to_ptr.hbm [resolvable:$true] %s641_s4 }
  0x2b   : > { %v1178_v12 = vperm.slane %v281_v11, 1  ;;  %v1180_v14 = vperm.slane %v281_v11, 0  ;;  %v1182_v15 = vperm.slane %v281_v11, 2  ;;  %s981_s24 = sshra.s32 %s642_s4, 4  ;;  %s987_s8 = scalar_lea.hbm %s1345_s3, 64  ;;  %s982_s24 = int_to_ptr.hbm [resolvable:$true] %s981_s24 }
  0x2c   : > { %s983_s15 = scalar_lea.hbm %s982_s24, 32  ;;  %p988_p8 = scmp.lt.s32.totalorder %s982_s24, %s1345_s3 }
  0x2d   : > { %p984_p5 = scmp.ne.s32.totalorder %s982_s24, %s983_s15  ;;  %p989_p10 = scmp.lt.s32.totalorder %s987_s8, %s983_s15 }
  0x2f   : > { %p985_p6 = pnand %p984_p5, %p1133_p9  ;;  %p990_p13 = por %p989_p10, %p988_p8 }
  0x31   : > { %900 = vset.pattern.permute.xlu1 %v1054_v1  ;;  %898 = vset.pattern.permute.xlu0 %v1055_v5  ;;  %p986_p7 = pneg %p985_p6 }
  0x32   : > { %317 = vperm.xlu0 %898, %v279_v2   ;;  %290 = vperm.xlu1 %900, %v278_v4  }
  0x33   : > { %902 = vset.pattern.permute.xlu2 %v1055_v5  ;;  %p991_p0 = pnand %p990_p13, %p986_p7 }
  0x34   : > { %313 = vperm.xlu2 %902, %v278_v4  }
  0x3a   : > { %903 = vset.pattern.permute.xlu1 %v1055_v5  ;;  %905 = vset.pattern.permute.xlu0 %v1053_v0 }
  0x3b   : > { %321 = vperm.xlu1 %903, %v280_v3   ;;  %342 = vperm.xlu0 %905, %v280_v3  }
  0x3c   : > { %904 = vset.pattern.permute.xlu2 %v1053_v0 }
  0x3d   : > { %334 = vperm.xlu2 %904, %v278_v4  }
  0x43   : > { %906 = vset.pattern.permute.xlu1 %v1054_v1 }
  0x44   : > { %285 = vperm.xlu1 %906, %v277_v6  }
  0x45   : > { %907 = vset.pattern.permute.xlu2 %v1055_v5 }
  0x46   : > { %309 = vperm.xlu2 %907, %v277_v6  }
  0x4c   : > { %908 = vset.pattern.permute.xlu1 %v1053_v0  ;;  %v526_v0 = vld [vmem:[%s1160_s23 + $0x80] sm:$0xff] }
  0x4d   : > { %330 = vperm.xlu1 %908, %v277_v6   ;;  %586 = vmatpush.msra.mxu1 %v526_v0 }
  0x84   : > { %v301_v7 = vpop.permute.xlu2 %300 }
  0x85   : > { %v1191_v29 = vsub.f32 %v1180_v14, %v301_v7 }
  0x87   : > { %v352_v35 = vmul.f32 %v1191_v29, %v1191_v29 }
  0x8e   : > { %v314_v8 = vpop.permute.xlu2 %313 }
  0x8f   : > { %v325_v16 = vsub.f32 %v1178_v12, %v314_v8 }
  0x91   : > { %v354_v22 = vmul.f32 %v325_v16, %v325_v16 }
  0x97   : > { %v335_v13 = vpop.permute.xlu2 %334 }
  0x98   : > { %v346_v18 = vsub.f32 %v1182_v15, %v335_v13 }
  0x9a   : > { %v362_v28 = vmul.f32 %v346_v18, %v346_v18 }
  0x9b   : > { %v339_v9 = vpop.permute.xlu1 %338  ;;  %v296_v10 = vpop.permute.xlu0 %295 }
  0x9c   : > { %v305_v17 = vsub.f32 %v1180_v14, %v296_v10  ;;  %v347_v21 = vsub.f32 %v1182_v15, %v339_v9 }
  0x9e   : > { %v351_v25 = vmul.f32 %v305_v17, %v305_v17  ;;  %v363_v30 = vmul.f32 %v347_v21, %v347_v21 }
  0xa0   : > { %v310_v61 = vpop.permute.xlu2 %309 }
  0xa1   : > { %v324_v1 = vsub.f32 %v1178_v12, %v310_v61 }
  0xa3   : > { %v353_v3 = vmul.f32 %v324_v1, %v324_v1 }
  0xa4   : > { %v318_v19 = vpop.permute.xlu0 %317  ;;  %v291_v20 = vpop.permute.xlu1 %290 }
  0xa5   : > { %v326_v23 = vsub.f32 %v1178_v12, %v318_v19  ;;  %v304_v24 = vsub.f32 %v1180_v14, %v291_v20 }
  0xa7   : > { %v355_v26 = vmul.f32 %v326_v23, %v326_v23  ;;  %v350_v27 = vmul.f32 %v304_v24, %v304_v24 }
  0xa9   : > { %v359_v31 = vadd.f32 %v355_v26, %v351_v25  ;;  %v358_v32 = vadd.f32 %v354_v22, %v350_v27 }
  0xab   : > { %v1193_v33 = vadd.f32 %v363_v30, %v359_v31  ;;  %v1195_v34 = vadd.f32 %v362_v28, %v358_v32 }
  0xad   : > { %vm371_vm0 = vcmp.lt.f32.partialorder %v1193_v33, 2.25  ;;  %vm370_vm1 = vcmp.lt.f32.partialorder %v1195_v34, 2.25  ;;  %v322_v36 = vpop.permute.xlu1 %321  ;;  %v343_v37 = vpop.permute.xlu0 %342  ;;  %929 = vrsqrt.f32 %v1195_v34  ;;  %vm400_vm7 = vcmp.eq.f32.partialorder %v1195_v34, inf }
  0xae   : > { %v1201_v39 = vsel %vm371_vm0, 1.0, %v1056_v38  ;;  %v1203_v40 = vsel %vm370_vm1, 1.0, %v1056_v38  ;;  %v327_v41 = vsub.f32 %v1178_v12, %v322_v36  ;;  %v348_v42 = vsub.f32 %v1182_v15, %v343_v37  ;;  %v525_v36 = vld [vmem:[%s1160_s23 + $0x78] sm:$0xff]  ;;  %v524_v37 = vld [vmem:[%s1160_s23 + $0x70] sm:$0xff] }
  0xaf   : > { %v435_v43 = vmul.f32 %v1201_v39, %v326_v23  ;;  %v438_v44 = vmul.f32 %v1203_v40, %v346_v18  ;;  %v434_v45 = vmul.f32 %v1203_v40, %v325_v16  ;;  %v430_v46 = vmul.f32 %v1203_v40, %v304_v24  ;;  %789 = vmatpush.msra.mxu2 %v525_v36 }
  0xb0   : > { %v356_v47 = vmul.f32 %v327_v41, %v327_v41  ;;  %v364_v48 = vmul.f32 %v348_v42, %v348_v42  ;;  %v431_v49 = vmul.f32 %v1201_v39, %v305_v17  ;;  %v439_v50 = vmul.f32 %v1201_v39, %v347_v21  ;;  %790 = vmatpush.msra.mxu3 %v525_v36 }
  0xb1   : > { %v914_v51 = vpack.i.bf16 %v434_v45, %v435_v43  ;;  %931 = vrsqrt.f32 %v1193_v33  ;;  %542 = vmatpush.msra.mxu0 %v525_v36  ;;  %791 = vmatpush.msra.mxu2 %v524_v37  ;;  %vm402_vm8 = vcmp.eq.f32.partialorder %v1195_v34, 0.0  ;;  %vm412_vm9 = vcmp.eq.f32.partialorder %v1193_v33, inf }
  0xb2   : > { %v360_v52 = vadd.f32 %v356_v47, %v352_v35  ;;  %v909_v53 = vpack.i.bf16 %v430_v46, %v431_v49  ;;  %v919_v54 = vpack.i.bf16 %v438_v44, %v439_v50  ;;  %792 = vmatpush.msra.mxu3 %v524_v37  ;;  %v415_v59 = vand.u32 2147483648, %v1193_v33 }
  0xb3   : > { %915 = vrot.lane.b32.xlu0 %v914_v51, %s1057_s9  ;;  %v930_v7 = vpop.eup %929  ;;  %543 = vmatpush.msra.mxu0 %v524_v37  ;;  %v403_v51 = vand.u32 2147483648, %v1195_v34  ;;  %vm414_vm10 = vcmp.eq.f32.partialorder %v1193_v33, 0.0 }
  0xb4   : > { %v1214_v55 = vadd.f32 %v364_v48, %v360_v52  ;;  %910 = vrot.lane.b32.xlu2 %v909_v53, %s1058_s10  ;;  %920 = vrot.lane.b32.xlu1 %v919_v54, %s1059_s11  ;;  %v394_v11 = vmul.f32 %v930_v7, %v1195_v34 }
  0xb6   : > { %vm372_vm2 = vcmp.lt.f32.partialorder %v1214_v55, 2.25  ;;  %v286_v58 = vpop.permute.xlu1 %285  ;;  %vm424_vm11 = vcmp.eq.f32.partialorder %v1214_v55, inf  ;;  %v427_v0 = vand.u32 2147483648, %v1214_v55  ;;  %vm426_vm12 = vcmp.eq.f32.partialorder %v1214_v55, 0.0 }
  0xb7   : > { %v1222_v60 = vsel %vm372_vm2, 1.0, %v1056_v38  ;;  %v303_v2 = vsub.f32 %v1180_v14, %v286_v58  ;;  %v932_v17 = vpop.eup %931 }
  0xb8   : > { %v440_v62 = vmul.f32 %v1222_v60, %v348_v42  ;;  %v436_v63 = vmul.f32 %v1222_v60, %v327_v41  ;;  %v432_v16 = vmul.f32 %v1222_v60, %v1191_v29  ;;  %v406_v22 = vmul.f32 %v932_v17, %v1193_v33 }
  0xb9   : > { %v349_v4 = vmul.f32 %v303_v2, %v303_v2 }
  0xba   : > { %v407_v26 = vmul.f32 %v932_v17, %v406_v22 }
  0xbb   : > { %471 = vrot.lane.b32.xlu0 %v436_v63, %s1057_s9  ;;  %v357_v8 = vadd.f32 %v353_v3, %v349_v4  ;;  %v521_v3 = vld [vmem:[%s1160_s23 + $0x58] sm:$0xff] }
  0xbc   : > { %487 = vrot.lane.b32.xlu1 %v440_v62, %s1059_s11  ;;  %v408_v32 = vmul.f32 0.5, %v407_v26 }
  0xbe   : > { %v409_v44 = vsub.f32 1.5, %v408_v32 }
  0xbf   : > { %v331_v5 = vpop.permute.xlu1 %330 }
  0xc0   : > { %v345_v6 = vsub.f32 %v1182_v15, %v331_v5  ;;  %v395_v15 = vmul.f32 %v930_v7, %v394_v11  ;;  %v410_v49 = vmul.f32 %v932_v17, %v409_v44  ;;  %v520_v5 = vld [vmem:[%s1160_s23 + $0x50] sm:$0xff]  ;;  %v513_v11 = vld [vmem:[%s1160_s23 + $0x18] sm:$0xff] }
  0xc2   : > { %v361_v9 = vmul.f32 %v345_v6, %v345_v6  ;;  %v396_v20 = vmul.f32 0.5, %v395_v15  ;;  %v411_v53 = vmul.f32 %v410_v49, %v1193_v33 }
  0xc4   : > { %v365_v10 = vadd.f32 %v361_v9, %v357_v8  ;;  %v397_v24 = vsub.f32 1.5, %v396_v20  ;;  %v413_v57 = vsel %vm412_vm9, %v1193_v33, %v411_v53  ;;  %v516_v8 = vld [vmem:[%s1160_s23 + $0x30] sm:$0xff]  ;;  %v515_v9 = vld [vmem:[%s1160_s23 + $0x28] sm:$0xff] }
  0xc6   : > { %vm369_vm3 = vcmp.lt.f32.partialorder %v365_v10, 2.25  ;;  %933 = vrsqrt.f32 %v365_v10  ;;  %v398_v30 = vmul.f32 %v930_v7, %v397_v24  ;;  %vm388_vm4 = vcmp.eq.f32.partialorder %v365_v10, inf  ;;  %v517_v7 = vld [vmem:[%s1160_s23 + $0x38] sm:$0xff] }
  0xc7   : > { %v1235_v12 = vsel %vm369_vm3, 1.0, %v1056_v38  ;;  %935 = vrsqrt.f32 %v1214_v55  ;;  %v391_v41 = vand.u32 2147483648, %v365_v10  ;;  %vm390_vm5 = vcmp.eq.f32.partialorder %v365_v10, 0.0 }
  0xc8   : > { %v437_v13 = vmul.f32 %v1235_v12, %v345_v6  ;;  %v429_v14 = vmul.f32 %v1235_v12, %v303_v2  ;;  %v433_v28 = vmul.f32 %v1235_v12, %v324_v1  ;;  %v399_v42 = vmul.f32 %v398_v30, %v1195_v34  ;;  %v523_v1 = vld [vmem:[%s1160_s23 + $0x68] sm:$0xff]  ;;  %v522_v2 = vld [vmem:[%s1160_s23 + $0x60] sm:$0xff] }
  0xc9   : > { %793 = vmatpush.msra.mxu2 %v523_v1  ;;  %794 = vmatpush.msra.mxu3 %v523_v1  ;;  %v518_v6 = vld [vmem:[%s1160_s23 + $0x40] sm:$0xff] }
  0xca   : > { %481 = vrot.lane.b32.xlu0 %v437_v13, %s1059_s11  ;;  %v924_v18 = vpack.i.bf16 %v429_v14, %v432_v16  ;;  %v401_v48 = vsel %vm400_vm7, %v1195_v34, %v399_v42  ;;  %v416_v34 = vsel %vm414_vm10, %v415_v59, %v413_v57  ;;  %544 = vmatpush.msra.mxu0 %v523_v1  ;;  %v512_v13 = vld [vmem:[%s1160_s23 + $0x10] sm:$0xff]  ;;  %v511_v14 = vld [vmem:[%s1160_s23 + $0x8] sm:$0xff]  ;;  %v510_v16 = vld [vmem:[%s1160_s23] sm:$0xff] }
  0xcb   : > { %v404_v52 = vsel %vm402_vm8, %v403_v51, %v401_v48  ;;  %v443_v62 = vmul.f32 %v1201_v39, %v416_v34  ;;  %795 = vmatpush.msra.mxu2 %v522_v2  ;;  %796 = vmatpush.msra.mxu3 %v522_v2 }
  0xcc   : > { %v934_v19 = vpop.eup %933  ;;  %925 = vrot.lane.b32.xlu2 %v924_v18, %s1058_s10  ;;  %v442_v56 = vmul.f32 %v1203_v40, %v404_v52  ;;  %545 = vmatpush.msra.mxu0 %v522_v2 }
  0xcd   : > { %v382_v21 = vmul.f32 %v934_v19, %v365_v10  ;;  %v936_v27 = vpop.eup %935  ;;  %797 = vmatpush.msra.mxu2 %v521_v3  ;;  %798 = vmatpush.msra.mxu3 %v521_v3 }
  0xce   : > { %v418_v35 = vmul.f32 %v936_v27, %v1214_v55  ;;  %546 = vmatpush.msra.mxu0 %v521_v3 }
  0xcf   : > { %v383_v23 = vmul.f32 %v934_v19, %v382_v21  ;;  %799 = vmatpush.msra.mxu2 %v520_v5  ;;  %800 = vmatpush.msra.mxu3 %v520_v5 }
  0xd0   : > { %v419_v45 = vmul.f32 %v936_v27, %v418_v35  ;;  %547 = vmatpush.msra.mxu0 %v520_v5 }
  0xd1   : > { %v384_v25 = vmul.f32 0.5, %v383_v23 }
  0xd2   : > { %v420_v50 = vmul.f32 0.5, %v419_v45 }
  0xd3   : > { %v385_v29 = vsub.f32 1.5, %v384_v25 }
  0xd4   : > { %465 = vrot.lane.b32.xlu2 %v433_v28, %s1057_s9  ;;  %v421_v54 = vsub.f32 1.5, %v420_v50 }
  0xd5   : > { %v386_v31 = vmul.f32 %v934_v19, %v385_v29 }
  0xd6   : > { %v422_v58 = vmul.f32 %v936_v27, %v421_v54 }
  0xd7   : > { %v387_v38 = vmul.f32 %v386_v31, %v365_v10 }
  0xd8   : > { %v423_v61 = vmul.f32 %v422_v58, %v1214_v55 }
  0xd9   : > { %v389_v43 = vsel %vm388_vm4, %v365_v10, %v387_v38  ;;  %v514_v10 = vld [vmem:[%s1160_s23 + $0x20] sm:$0xff] }
  0xda   : > { %v392_v46 = vsel %vm390_vm5, %v391_v41, %v389_v43  ;;  %v425_v63 = vsel %vm424_vm11, %v1214_v55, %v423_v61  ;;  %v519_v55 = vld [vmem:[%s1160_s23 + $0x48] sm:$0xff] }
  0xdb   : > { %v441_v47 = vmul.f32 %v1235_v12, %v392_v46  ;;  %v428_v33 = vsel %vm426_vm12, %v427_v0, %v425_v63  ;;  %801 = vmatpush.msra.mxu2 %v519_v55  ;;  %802 = vmatpush.msra.mxu3 %v519_v55 }
  0xdc   : > { %v444_v4 = vmul.f32 %v1222_v60, %v428_v33  ;;  %548 = vmatpush.msra.mxu0 %v519_v55 }
  0xdd   : > { %778 = vmatmul.msk.f32.vlgmr.msra.gmra.mxu1 %vm493_vm6, %v441_v47  ;;  %803 = vmatpush.msra.mxu2 %v518_v6 }
  0xde   : > { %804 = vmatpush.msra.mxu3 %v518_v6  ;;  %549 = vmatpush.msra.mxu0 %v518_v6 }
  0xdf   : > { %805 = vmatpush.msra.mxu2 %v517_v7 }
  0xe0   : > { %806 = vmatpush.msra.mxu3 %v517_v7  ;;  %550 = vmatpush.msra.mxu0 %v517_v7 }
  0xe1   : > { %807 = vmatpush.msra.mxu2 %v516_v8 }
  0xe2   : > { %808 = vmatpush.msra.mxu3 %v516_v8  ;;  %551 = vmatpush.msra.mxu0 %v516_v8 }
  0xe3   : > { %809 = vmatpush.msra.mxu2 %v515_v9 }
  0xe4   : > { %810 = vmatpush.msra.mxu3 %v515_v9  ;;  %552 = vmatpush.msra.mxu0 %v515_v9 }
  0xe5   : > { %779 = vmatmul.msk.f32.gmra.mxu1 %vm493_vm6, %v442_v56  ;;  %811 = vmatpush.msra.mxu2 %v514_v10 }
  0xe6   : > { %812 = vmatpush.msra.mxu3 %v514_v10  ;;  %553 = vmatpush.msra.mxu0 %v514_v10 }
  0xe7   : > { %813 = vmatpush.msra.mxu2 %v513_v11 }
  0xe8   : > { %814 = vmatpush.msra.mxu3 %v513_v11  ;;  %554 = vmatpush.msra.mxu0 %v513_v11 }
  0xe9   : > { %815 = vmatpush.msra.mxu2 %v512_v13 }
  0xea   : > { %816 = vmatpush.msra.mxu3 %v512_v13  ;;  %555 = vmatpush.msra.mxu0 %v512_v13 }
  0xeb   : > { %817 = vmatpush.msra.mxu2 %v511_v14 }
  0xec   : > { %818 = vmatpush.msra.mxu3 %v511_v14  ;;  %556 = vmatpush.msra.mxu0 %v511_v14 }
  0xed   : > { %780 = vmatmul.msk.f32.gmra.mxu1 %vm493_vm6, %v443_v62  ;;  %819 = vmatpush.msra.mxu2 %v510_v16 }
  0xee   : > { %820 = vmatpush.msra.mxu3 %v510_v16  ;;  %557 = vmatpush.msra.mxu0 %v510_v16 }
  0xf5   : > { %781 = vmatmul.msk.f32.gmra.mxu1 %vm493_vm6, %v444_v4 }
 0x10e   : > { %v911_v15 = vpop.permute.xlu2 %910 }
 0x10f   : > { %v913_v17 = vunpack.i.h.bf16 %v911_v15  ;;  %v912_v18 = vunpack.i.l.bf16 %v911_v15 }
 0x111   : > { %v495_v26 = vsel %vm493_vm6, %v1203_v40, %v913_v17  ;;  %v496_v27 = vsel %vm493_vm6, %v1201_v39, %v912_v18 }
 0x125   : > { %v916_v19 = vpop.permute.xlu0 %915 }
 0x126   : > { %v918_v20 = vunpack.i.h.bf16 %v916_v19  ;;  %v917_v21 = vunpack.i.l.bf16 %v916_v19  ;;  %v921_v22 = vpop.permute.xlu1 %920  ;;  %v926_v23 = vpop.permute.xlu2 %925 }
 0x127   : > { %v923_v24 = vunpack.i.h.bf16 %v921_v22  ;;  %v922_v25 = vunpack.i.l.bf16 %v921_v22  ;;  %v927_v30 = vunpack.i.l.bf16 %v926_v23  ;;  %v928_v38 = vunpack.i.h.bf16 %v926_v23 }
 0x128   : > { %v500_v28 = vsel %vm498_vm13, %v495_v26, %v918_v20  ;;  %v501_v29 = vsel %vm498_vm13, %v496_v27, %v917_v21 }
 0x129   : > { %v505_v31 = vsel %vm503_vm14, %v500_v28, %v923_v24  ;;  %v506_v32 = vsel %vm503_vm14, %v501_v29, %v922_v25  ;;  %v497_v36 = vsel %vm493_vm6, %v1222_v60, %v927_v30  ;;  %v494_v42 = vsel %vm493_vm6, %v1235_v12, %v928_v38 }
 0x12a   : > { %561 = vmatmul.f32.vlgmr.msra.gmra.mxu2 %v505_v31  ;;  %564 = vmatmul.f32.vlgmr.msra.gmra.mxu3 %v506_v32 }
 0x12d   : > { %v472_v35 = vpop.permute.xlu0 %471 }
 0x12e   : > { %v502_v40 = vsel %vm498_vm13, %v497_v36, %v472_v35  ;;  %v488_v37 = vpop.permute.xlu1 %487  ;;  %v466_v41 = vpop.permute.xlu2 %465 }
 0x12f   : > { %v507_v39 = vsel %vm503_vm14, %v502_v40, %v488_v37  ;;  %v499_v43 = vsel %vm498_vm13, %v494_v42, %v466_v41 }
 0x132   : > { %567 = vmatmul.f32.gmra.mxu3 %v507_v39 }
 0x13c   : > { %v482_v44 = vpop.permute.xlu0 %481 }
 0x13d   : > { %v504_v45 = vsel %vm503_vm14, %v499_v43, %v482_v44 }
 0x13e   : > { %558 = vmatmul.f32.vlgmr.msra.gmra.mxu0 %v504_v45 }
 0x15a   : > { %v588_v46 = vpop.f32.mrf.mxu1 }
 0x162   : > { %v591_v60 = vpop.f32.mrf.mxu1 }
 0x16a   : > { %v594_v47 = vpop.f32.mrf.mxu1 }
 0x172   : > { %v597_v12 = vpop.f32.mrf.mxu1 }
 0x1ad   : > { %v562_v48 = vpop.f32.mrf.mxu2  ;;  %v565_v49 = vpop.f32.mrf.mxu3 }
 0x1ae   : > { %v592_v50 = vadd.f32 %v591_v60, %v562_v48  ;;  %v595_v51 = vadd.f32 %v594_v47, %v565_v49 }
 0x1b0   : > { %605 = vst [vmem:[%s258_s21 + $0x8] sm:$0xff] %v592_v50 }
 0x1b1   : > { %606 = vst [vmem:[%s258_s21 + $0x10] sm:$0xff] %v595_v51 }
 0x1b5   : > { %v568_v52 = vpop.f32.mrf.mxu3 }
 0x1b6   : > { %v598_v53 = vadd.f32 %v597_v12, %v568_v52 }
 0x1b8   : > { %607 = vst [vmem:[%s258_s21 + $0x18] sm:$0xff] %v598_v53 }
 0x1bb   : > { %v559_v54 = vpop.f32.mrf.mxu0 }
 0x1bc   : > { %v589_v56 = vadd.f32 %v588_v46, %v559_v54 }
 0x1be   : > { %604 = vst [vmem:[%s258_s21] sm:$0xff] %v589_v56 }
 0x1bf   : > { %994 = shalt.err (!%p991_p0)
}
 0x1c0   : > { %s1060_s19 = smov 128   ;;  %s1061_s11 = smov 8  }
 0x1c1   : > { %826 = dma.vmem_to_hbm [thread:$0]  (%p1133_p9), %s640_s30, 512, %s642_s4, %s625_s5, %s1060_s19, %s1060_s19, %s1061_s11  }
 0x1c2 PF: > { %s656_s18 = sand.u32 1, %s1029_s12   ;;  %p833_p1 = pnand %p767_p12, %p1140_p11 }
 0x1c3   : > { %s657_s21 = scalar_lea.sflag [#allocation4], %s656_s18 }
 0x1c4   : > { %p834_p2 = pneg %p833_p1 }
 0x1c6   : > { %1024 = dma.done.wait (%p834_p2), %s657_s21, 512  }
 0x1c7   : > { %1026 = vsyncadd (%p834_p2), %s657_s21, 4294966784  ;;  %s19_s17 = sadd.s32 1, %s1049_s17   ;;  %s1350_s12 = smov %s1033_s13 }
 0x1c8   : > { %p16_p3 = scmp.ge.s32.totalorder %s19_s17, 4   ;;  %s1351_s13 = smov %s1037_s14 }
 0x1c9   : > { %s1352_s14 = smov %s1138_s26  ;;  %s1353_s15 = smov %s1045_s16 }
 0x1ca   : > { %s1354_s16 = smov %s1356_s20  ;;  %18 = sbr.rel (!%p16_p3) target bundleno = 6 (0x6), region = 92 }
 0x1cf   :  { %663 = vsyncpa [#allocation3], 1 }
 0x1d0   :  { %665 = vsyncpa [#allocation3 + $0x1], 1 }
 0x1d1   :  { %666 = vsyncpa [#allocation4], 1 }
 0x1d2   :  { %668 = vsyncpa [#allocation4 + $0x1], 1 }

</bundles_post_ra>
